<compile_context>
chip_gen: v7x
topology: tpu7x:2x2x1
jax: 0.10.0
libtpu: 0.0.40
codegen_flags: <defaults>
</compile_context>

<pallas_src>
import functools

import jax
import jax.numpy as jnp
from jax.experimental import pallas as pl
from jax.experimental.pallas import tpu as pltpu


def _focal_kernel(x_ref, t_ref, o_ref, *, alpha, gamma, eps):
    """x_ref: (C, TS) logits (any float dtype), t_ref: (1, TS) int32,
    o_ref: (1, TS) float32 per-pixel focal loss."""
    x = x_ref[...].astype(jnp.float32)                        # (C, TS)
    t = t_ref[...]                                            # (1, TS)

    # Numerically stable softmax pieces over the class axis (axis 0).
    m = jnp.max(x, axis=0, keepdims=True)                     # (1, TS)
    ex = jnp.exp(x - m)                                       # (C, TS)  C exps
    denom = jnp.sum(ex, axis=0, keepdims=True)                # (1, TS)

    # Select target-class numerator via iota/one-hot (no gather).
    class_ids = jax.lax.broadcasted_iota(jnp.int32, x.shape, 0)   # (C, TS)
    onehot = (class_ids == t).astype(jnp.float32)                 # (C, TS)
    ex_t = jnp.sum(onehot * ex, axis=0, keepdims=True)            # (1, TS)

    # p_t = softmax[target] + eps, via reciprocal-multiply.
    inv = pl.reciprocal(denom, approx=False)                   # (1, TS)
    p_t = ex_t * inv + eps                                     # (1, TS)

    one_minus = 1.0 - p_t
    g = float(gamma)
    if g.is_integer() and g >= 0.0:
        # Integer gamma: pure VPU multiplies (no exp/log power).
        gi = int(g)
        w = jnp.ones_like(one_minus)
        for _ in range(gi):
            w = w * one_minus
    else:
        # Non-integer gamma: clamp base to avoid NaN when softmax saturates
        # and (1 - p_t) is a tiny negative number (p_t = softmax + eps > 1).
        w = jnp.power(jnp.maximum(one_minus, 0.0), g)

    o_ref[...] = (-alpha) * w * jnp.log(p_t)                   # (1, TS)


def _choose_tile(S, C, itemsize):
    """Pick a lane-tile TS: multiple of 128, VMEM-budgeted (~2 MiB / logits
    block, double-buffered => ~4 MiB), capped at 2048 lanes."""
    budget_bytes = 2 * 1024 * 1024
    ts = budget_bytes // max(1, C * itemsize)
    ts = max(128, min(2048, (ts // 128) * 128))
    s_pad128 = ((S + 127) // 128) * 128
    return min(ts, s_pad128)


def focal_loss_kornia_pallas(logits, target, alpha, gamma=2.0,
                             reduction="none", eps=1e-6):
    """logits: (B, C, *) float; target: (B, *) int. Mirrors FocalLossKornia.forward."""
    B, C = logits.shape[:2]
    x = logits.reshape(B, C, -1)                              # keep input dtype
    S = x.shape[-1]
    t = target.reshape(B, 1, S).astype(jnp.int32)

    TS = _choose_tile(S, C, jnp.dtype(x.dtype).itemsize)
    S_pad = ((S + TS - 1) // TS) * TS
    if S_pad != S:
        # Padded columns compute a finite dummy loss (class 0 of zero logits)
        # and are sliced off after the call.
        x = jnp.pad(x, ((0, 0), (0, 0), (0, S_pad - S)))
        t = jnp.pad(t, ((0, 0), (0, 0), (0, S_pad - S)))
    n_tiles = S_pad // TS

    kernel = functools.partial(
        _focal_kernel, alpha=float(alpha), gamma=float(gamma), eps=float(eps))

    out = pl.pallas_call(
        kernel,
        out_shape=jax.ShapeDtypeStruct((B, 1, S_pad), jnp.float32),
        grid_spec=pltpu.PrefetchScalarGridSpec(
            num_scalar_prefetch=0,
            grid=(B, n_tiles),
            in_specs=[
                pl.BlockSpec((None, C, TS), lambda b, s: (b, 0, s)),  # (C, TS)
                pl.BlockSpec((None, 1, TS), lambda b, s: (b, 0, s)),  # (1, TS)
            ],
            out_specs=pl.BlockSpec((None, 1, TS), lambda b, s: (b, 0, s)),
        ),
        compiler_params=pltpu.CompilerParams(
            dimension_semantics=("parallel", "parallel")),
    )(x, t)

    loss = out.reshape(B, S_pad)[:, :S]                       # reduction == 'none'
    # TODO(synk): for 'mean'/'sum', fuse the reduction into the kernel with an
    # accumulator over an 'arbitrary' S-tile axis to avoid the (B, S) HBM
    # round-trip; kept as a plain JAX reduce for simplicity/portability.
    if reduction == "mean":
        loss = jnp.mean(loss)
    elif reduction == "sum":
        loss = jnp.sum(loss)
    return loss


def _focal_loss_ref(logits, target, alpha, gamma, reduction, eps):
    """Pure-JAX reference for validation."""
    B, C = logits.shape[:2]
    x = logits.reshape(B, C, -1).astype(jnp.float32)
    t = target.reshape(B, -1).astype(jnp.int32)
    p = jax.nn.softmax(x, axis=1) + eps
    focal = -alpha * jnp.power(1.0 - p, gamma) * jnp.log(p)
    onehot = jax.nn.one_hot(t, C, axis=1, dtype=focal.dtype)
    loss = jnp.sum(onehot * focal, axis=1)
    if reduction == "mean":
        loss = jnp.mean(loss)
    elif reduction == "sum":
        loss = jnp.sum(loss)
    return loss


if __name__ == "__main__":
    # FocalLossKornia(alpha=0.5, gamma=2.0), eps=1e-6
    alpha, gamma, eps = 0.5, 2.0, 1e-6

    key = jax.random.PRNGKey(0)
    k1, k2, k3, k4 = jax.random.split(key, 4)

    # Case 1: f32 logits, S multiple of 128, reduction='none'.
    B, C, H, W = 2, 4, 16, 16
    logits = jax.random.normal(k1, (B, C, H, W), dtype=jnp.float32)
    target = jax.random.randint(k2, (B, H, W), 0, C, dtype=jnp.int32)

    out = jax.block_until_ready(
        focal_loss_kornia_pallas(logits, target, alpha, gamma, "none", eps))
    ref = _focal_loss_ref(logits, target, alpha, gamma, "none", eps)
    assert out.shape == (B, H * W), out.shape
    assert jnp.allclose(out, ref, atol=1e-5, rtol=1e-5), "mismatch vs JAX reference"

    # Case 2: 'mean' reduction path.
    out_mean = jax.block_until_ready(
        focal_loss_kornia_pallas(logits, target, alpha, gamma, "mean", eps))
    ref_mean = _focal_loss_ref(logits, target, alpha, gamma, "mean", eps)
    assert jnp.allclose(out_mean, ref_mean, atol=1e-5, rtol=1e-5)

    # Case 3: bf16 logits (kernel casts in-tile) and S not a multiple of 128
    # (exercises the padding / slice path).
    B2, C2, H2, W2 = 2, 4, 10, 10
    logits_bf = jax.random.normal(k3, (B2, C2, H2, W2), dtype=jnp.bfloat16)
    target2 = jax.random.randint(k4, (B2, H2, W2), 0, C2, dtype=jnp.int32)

    out2 = jax.block_until_ready(
        focal_loss_kornia_pallas(logits_bf, target2, alpha, gamma, "none", eps))
    ref2 = _focal_loss_ref(logits_bf, target2, alpha, gamma, "none", eps)
    assert out2.shape == (B2, H2 * W2), out2.shape
    assert jnp.allclose(out2, ref2, atol=1e-5, rtol=1e-5), "bf16/padded mismatch"

    print("KERNEL_OK")
</pallas_src>

<mosaic_0001>
module attributes {stable_mosaic.version = 11 : i64} {
  func.func @_focal_kernel(%arg0: i32, %arg1: i32, %arg2: memref<1x4x256xf32, #tpu.memory_space<vmem>>, %arg3: memref<1x1x256xi32, #tpu.memory_space<vmem>>, %arg4: memref<1x1x256xf32, #tpu.memory_space<vmem>>) attributes {dimension_semantics = [#tpu.dimension_semantics<parallel>, #tpu.dimension_semantics<parallel>], iteration_bounds = array<i64: 2, 1>, scalar_prefetch = 0 : i64, scratch_operands = 0 : i64, tpu.core_type = #tpu.core_type<tc>, window_params = [{transform_indices = @transform_0, window_bounds = array<i64: 1, 4, 256>}, {transform_indices = @transform_1, window_bounds = array<i64: 1, 1, 256>}, {transform_indices = @transform_2, window_bounds = array<i64: 1, 1, 256>}]} {
    %c0 = arith.constant 0 : index
    %c0_0 = arith.constant 0 : index
    %c0_1 = arith.constant 0 : index
    %0 = vector.load %arg2[%c0, %c0_0, %c0_1] : memref<1x4x256xf32, #tpu.memory_space<vmem>>, vector<1x4x256xf32>
    %1 = vector.shape_cast %0 : vector<1x4x256xf32> to vector<4x256xf32>
    %c0_2 = arith.constant 0 : index
    %c0_3 = arith.constant 0 : index
    %c0_4 = arith.constant 0 : index
    %2 = vector.load %arg3[%c0_2, %c0_3, %c0_4] : memref<1x1x256xi32, #tpu.memory_space<vmem>>, vector<1x1x256xi32>
    %3 = vector.shape_cast %2 : vector<1x1x256xi32> to vector<1x256xi32>
    %cst = arith.constant dense<0xFF800000> : vector<256xf32>
    %4 = vector.multi_reduction <maximumf>, %1, %cst [0] : vector<4x256xf32> to vector<256xf32>
    %5 = vector.shape_cast %4 : vector<256xf32> to vector<1x256xf32>
    %6 = vector.broadcast %5 : vector<1x256xf32> to vector<4x256xf32>
    %7 = arith.subf %1, %6 : vector<4x256xf32>
    %8 = math.exp %7 : vector<4x256xf32>
    %cst_5 = arith.constant dense<0.000000e+00> : vector<256xf32>
    %9 = vector.multi_reduction <add>, %8, %cst_5 [0] : vector<4x256xf32> to vector<256xf32>
    %10 = vector.shape_cast %9 : vector<256xf32> to vector<1x256xf32>
    %11 = tpu.iota {dimensions = array<i32: 0>} : vector<4x256xi32>
    %12 = vector.broadcast %3 : vector<1x256xi32> to vector<4x256xi32>
    %13 = arith.cmpi eq, %11, %12 : vector<4x256xi32>
    %14 = arith.extui %13 : vector<4x256xi1> to vector<4x256xi32>
    %15 = arith.sitofp %14 : vector<4x256xi32> to vector<4x256xf32>
    %16 = arith.mulf %15, %8 : vector<4x256xf32>
    %cst_6 = arith.constant dense<0.000000e+00> : vector<256xf32>
    %17 = vector.multi_reduction <add>, %16, %cst_6 [0] : vector<4x256xf32> to vector<256xf32>
    %18 = vector.shape_cast %17 : vector<256xf32> to vector<1x256xf32>
    %19 = tpu.reciprocal %10 : vector<1x256xf32> -> vector<1x256xf32>
    %20 = arith.mulf %18, %19 : vector<1x256xf32>
    %cst_7 = arith.constant 9.99999997E-7 : f32
    %21 = vector.broadcast %cst_7 : f32 to vector<1x256xf32>
    %22 = arith.addf %20, %21 : vector<1x256xf32>
    %cst_8 = arith.constant 1.000000e+00 : f32
    %23 = vector.broadcast %cst_8 : f32 to vector<1x256xf32>
    %24 = arith.subf %23, %22 : vector<1x256xf32>
    %cst_9 = arith.constant 1.000000e+00 : f32
    %25 = vector.broadcast %cst_9 : f32 to vector<1x256xf32>
    %26 = arith.mulf %25, %24 : vector<1x256xf32>
    %27 = arith.mulf %26, %24 : vector<1x256xf32>
    %cst_10 = arith.constant -5.000000e-01 : f32
    %28 = vector.broadcast %cst_10 : f32 to vector<1x256xf32>
    %29 = arith.mulf %28, %27 : vector<1x256xf32>
    %30 = math.log %22 : vector<1x256xf32>
    %31 = arith.mulf %29, %30 : vector<1x256xf32>
    %c0_11 = arith.constant 0 : index
    %c0_12 = arith.constant 0 : index
    %c0_13 = arith.constant 0 : index
    %32 = vector.load %arg4[%c0_11, %c0_12, %c0_13] : memref<1x1x256xf32, #tpu.memory_space<vmem>>, vector<1x1x256xf32>
    %33 = vector.shape_cast %32 : vector<1x1x256xf32> to vector<1x256xf32>
    %34 = vector.shape_cast %31 : vector<1x256xf32> to vector<1x1x256xf32>
    tpu.vector_store %arg4[%c0_11, %c0_12, %c0_13], %34 {strides = array<i32>} : memref<1x1x256xf32, #tpu.memory_space<vmem>>, vector<1x1x256xf32>,
    return
  }
  func.func @transform_0(%arg0: i32, %arg1: i32) -> (i32, i32, i32) {
    %c0_i32 = arith.constant 0 : i32
    %c0_i32_0 = arith.constant 0 : i32
    return %arg0, %c0_i32, %arg1 : i32, i32, i32
  }
  func.func @transform_1(%arg0: i32, %arg1: i32) -> (i32, i32, i32) {
    %c0_i32 = arith.constant 0 : i32
    %c0_i32_0 = arith.constant 0 : i32
    return %arg0, %c0_i32, %arg1 : i32, i32, i32
  }
  func.func @transform_2(%arg0: i32, %arg1: i32) -> (i32, i32, i32) {
    %c0_i32 = arith.constant 0 : i32
    %c0_i32_0 = arith.constant 0 : i32
    return %arg0, %c0_i32, %arg1 : i32, i32, i32
  }
}

</mosaic_0001>

<bundles_post_ra>
// kernel: tpu_custom_call.1
= control target key start
LH: loop header
LB: loop body
LE: loop exit
PB: predicated region body
PF: predicated region fallthrough
CT: control target
= control target key end

     0   :  { %7 = vsyncpa [#allocation3], 0  ;;  %s973_s0 = inlined_call_operand.hbm [shape: f32[2,4,256], index: 0, kind: input, shape index: {}]   ;;  %s974_s1 = inlined_call_operand.hbm [shape: s32[2,1,256], index: 1, kind: input, shape index: {}]   ;;  %s975_s2 = inlined_call_operand.hbm [shape: f32[2,1,256], index: 2, kind: output, shape index: {}]  }
   0x1   :  { %9 = vsyncpa [#allocation3 + $0x1], 0 }
   0x2   :  { %10 = vsyncpa [#allocation6], 0 }
   0x3   :  { %12 = vsyncpa [#allocation6 + $0x1], 0 }
   0x4   :  { %13 = vsyncpa [#allocation4], 0 }
   0x5   :  { %15 = vsyncpa [#allocation4 + $0x1], 0  ;;  %s739_s9 = smov 0   ;;  %s741_s10 = smov 0  }
   0x6   :  { %s743_s11 = smov 0   ;;  %s745_s12 = smov 0  }
   0x7   :  { %s747_s13 = smov 0   ;;  %s749_s14 = smov 0  }
   0x8 LB: > { %s467_s15 = sadd.s32 4294967295, %s717_s14   ;;  %s468_s16 = sadd.s32 4294967294, %s717_s14   ;;  %s717_s14 = sphi %s749_s14, %s21_s14   ;;  %s713_s13 = sphi %s747_s13, %s995_s13   ;;  %s709_s12 = sphi %s745_s12, %s994_s12   ;;  %s705_s11 = sphi %s743_s11, %s993_s11   ;;  %s701_s10 = sphi %s741_s10, %s992_s10   ;;  %s697_s9 = sphi %s739_s9, %s991_s9  }
   0x9   : > { %s33_s17 = sadd.s32 1, %s713_s13  ;;  %s42_s18 = sadd.s32 1, %s705_s11 }
   0xa   : > { %p35_p0 = scmp.ge.s32.totalorder %s33_s17, 2  ;;  %p49_p1 = scmp.ne.s32.totalorder %s705_s11, %s701_s10 }
   0xb   : > { %p50_p2 = scmp.eq.s32.totalorder %s717_s14, 0  ;;  %p55_p3 = scmp.ne.s32.totalorder %s701_s10, %s697_s9 }
   0xc   : > { %s997_s17 = smov (%p35_p0, %s33_s17), 0  ;;  %p56_p5 = scmp.eq.s32.totalorder %s467_s15, 0 }
   0xd   : > { %p780_p4 = por %p50_p2, %p49_p1  ;;  %s37_s20 = ssub.s32 %s713_s13, %s997_s17 }
   0xe   : > { %p109_p6 = scmp.eq.s32.totalorder %s467_s15, 1  ;;  %p40_p7 = scmp.eq.s32.totalorder %s37_s20, 0 }
   0xf   : > { %p786_p8 = por %p56_p5, %p55_p3  ;;  %p115_p10 = scmp.eq.s32.totalorder %s468_s16, 1 }
  0x10   : > { %p790_p9 = por %p109_p6, %p49_p1  ;;  %p508_p13 = scmp.lt.s32.totalorder %s717_s14, 2 }
  0x11   : > { %s979_s21 = scalar_select %p786_p8, 1, 0 }
  0x12   : > { %s980_s22 = scalar_select %p790_p9, 1, 0 }
  0x13   : > { %s795_s23 = scalar_select %p40_p7, %s705_s11, %s42_s18  }
  0x14   : > { %p797_p11 = por %p115_p10, %p55_p3  ;;  %s804_s25 = sand.u32 1, %s705_s11  }
  0x15   : > { %s471_s26 = sshll.u32 %s804_s25, 3  ;;  %s488_s27 = sshll.u32 %s713_s13, 7 }
  0x16   : > { %s981_s24 = scalar_select %p797_p11, 1, 0 }
  0x17   : > { %s811_s30 = scalar_lea.hbm %s973_s0, %s488_s27  ;;  %s139_s3 = scalar_lea.vmem [#allocation2], %s471_s26 }
  0x18   : > { %s149_s4 = sshll.u32 %s139_s3, 4  ;;  %p817_p0 = pnand %p508_p13, %p780_p4  ;;  %s813_s4 = int_to_ptr.vmem [resolvable:$true] %s149_s4 }
  0x19   : > { %s136_s6 = scalar_lea.sflag [#allocation3], %s804_s25  ;;  %s571_s7 = scalar_lea.hbm %s811_s30, 128 }
  0x1a   : > { %p572_p3 = scmp.ne.s32.totalorder %s811_s30, %s571_s7  ;;  %p573_p5 = pneg %p817_p0 }
  0x1b   : > { %s576_s16 = scalar_lea.hbm %s973_s0, 256  ;;  %p577_p4 = scmp.lt.u32.totalorder %s811_s30, %s973_s0 }
  0x1c   : > { %p574_p6 = pnand %p573_p5, %p572_p3  ;;  %p578_p10 = scmp.lt.u32.totalorder %s576_s16, %s571_s7 }
  0x1d   : > { %p580_p12 = scmp.lt.u32.totalorder %s571_s7, %s811_s30 }
  0x1e   : > { %p575_p7 = pneg %p574_p6  ;;  %p579_p13 = por %p578_p10, %p577_p4 }
  0x20   : > { %p581_p1 = por %p580_p12, %p579_p13 }
  0x22   : > { %p582_p2 = pnand %p581_p1, %p575_p7 }
  0x24   : > { %585 = shalt.err (!%p582_p2)
}
  0x25   : > { %s586_s20 = scalar_lea.vmem %s813_s4, 128  ;;  %s719_s26 = smov [#allocation2]  }
  0x26   : > { %p587_p3 = scmp.ne.s32.totalorder %s813_s4, %s586_s20  ;;  %s591_s27 = sshll.u32 %s719_s26, 4  ;;  %s592_s27 = int_to_ptr.vmem [resolvable:$false] %s591_s27 }
  0x27   : > { %s593_s28 = scalar_lea.vmem %s592_s27, 256  ;;  %p594_p9 = scmp.lt.s32.totalorder %s813_s4, %s592_s27 }
  0x28   : > { %p589_p6 = pnand %p587_p3, %p573_p5  ;;  %p595_p4 = scmp.lt.s32.totalorder %s593_s28, %s586_s20 }
  0x2a   : > { %p590_p11 = pneg %p589_p6  ;;  %p596_p10 = por %p595_p4, %p594_p9 }
  0x2c   : > { %p597_p12 = pnand %p596_p10, %p590_p11 }
  0x2e   : > { %600 = shalt.err (!%p597_p12)
}
  0x2f   : > { %500 = dma.hbm_to_vmem [thread:$0]  (!%p817_p0), %s811_s30, 128, %s813_s4, %s136_s6  }
  0x30   : > { %p983_p1 = scmp.lt.s32.totalorder %s717_s14, 3  ;;  %p984_p2 = scmp.ge.s32.totalorder %s717_s14, 1 }
  0x31   : > { %s474_s3 = sshll.u32 %s804_s25, 1  ;;  %s489_s7 = sshll.u32 %s713_s13, 5 }
  0x32   : > { %p853_p7 = pnand %p984_p2, %p983_p1  ;;  %s862_s16 = scalar_lea.hbm %s974_s1, %s489_s7 }
  0x33   : > { %s160_s18 = scalar_lea.vmem [#allocation5], %s474_s3  ;;  %s157_s30 = scalar_lea.sflag [#allocation6], %s804_s25 }
  0x34   : > { %s985_s29 = scalar_select %p853_p7, 1, 0 }
  0x35   : > { %s170_s19 = sshll.u32 %s160_s18, 4  ;;  %s601_s4 = scalar_lea.hbm %s862_s16, 32  ;;  %s171_s19 = int_to_ptr.vmem [resolvable:$true] %s170_s19 }
  0x36   : > { %p602_p9 = scmp.ne.s32.totalorder %s862_s16, %s601_s4  ;;  %s606_s26 = scalar_lea.hbm %s974_s1, 64 }
  0x37   : > { %p607_p3 = scmp.lt.u32.totalorder %s862_s16, %s974_s1  ;;  %p608_p6 = scmp.lt.u32.totalorder %s606_s26, %s601_s4 }
  0x38   : > { %p604_p11 = pnand %p602_p9, %p573_p5  ;;  %p610_p10 = scmp.lt.u32.totalorder %s601_s4, %s862_s16 }
  0x39   : > { %p609_p4 = por %p608_p6, %p607_p3 }
  0x3a   : > { %p605_p13 = pneg %p604_p11 }
  0x3b   : > { %p611_p12 = por %p610_p10, %p609_p4 }
  0x3d   : > { %p612_p1 = pnand %p611_p12, %p605_p13 }
  0x3f   : > { %615 = shalt.err (!%p612_p1)
}
  0x40   : > { %s616_s25 = scalar_lea.vmem %s171_s19, 32  ;;  %s720_s3 = smov [#allocation5]  }
  0x41   : > { %p617_p2 = scmp.ne.s32.totalorder %s171_s19, %s616_s25  ;;  %s621_s7 = sshll.u32 %s720_s3, 4  ;;  %s622_s7 = int_to_ptr.vmem [resolvable:$false] %s621_s7 }
  0x42   : > { %s623_s8 = scalar_lea.vmem %s622_s7, 64  ;;  %p624_p8 = scmp.lt.s32.totalorder %s171_s19, %s622_s7 }
  0x43   : > { %p619_p9 = pnand %p617_p2, %p573_p5  ;;  %p625_p7 = scmp.lt.s32.totalorder %s623_s8, %s616_s25 }
  0x45   : > { %p620_p11 = pneg %p619_p9  ;;  %p626_p3 = por %p625_p7, %p624_p8 }
  0x47   : > { %p627_p6 = pnand %p626_p3, %p620_p11 }
  0x49   : > { %630 = shalt.err (!%p627_p6)
}
  0x4a   : > { %503 = dma.hbm_to_vmem [thread:$0]  (!%p817_p0), %s862_s16, 32, %s171_s19, %s157_s30  }
  0x4b   : > { %p986_p13 = scmp.ne.s32.totalorder %s985_s29, 0 }
  0x4c   : > { %s887_s15 = sand.u32 (!%p986_p13), 1, %s701_s10   ;;  %p987_p5 = scmp.ne.s32.totalorder (!%p986_p13), %s979_s21, 0 }
  0x4d   : > { %179 = sbr.rel (%p986_p13) target bundleno = 186 (0xba), region = 28  ;;  %s478_s18 = sshll.u32 (!%p986_p13), %s887_s15, 3 }
  0x4e   : > { %s182_s4 = scalar_lea.sflag (!%p986_p13), [#allocation3], %s887_s15  ;;  %s185_s6 = scalar_lea.vmem (!%p986_p13), [#allocation2], %s478_s18 }
  0x54   : > { %684 = dma.done.wait (%p987_p5), %s182_s4, 128  }
  0x55   : > { %686 = vsyncadd (%p987_p5), %s182_s4, 4294967168  ;;  %s479_s5 = sshll.u32 %s887_s15, 1  ;;  %s191_s29 = scalar_lea.sflag [#allocation6], %s887_s15 }
  0x56   : > { %s194_s16 = scalar_lea.vmem [#allocation5], %s479_s5 }
  0x57   : > { %688 = dma.done.wait (%p987_p5), %s191_s29, 32  }
  0x58   : > { %690 = vsyncadd (%p987_p5), %s191_s29, 4294967264  ;;  %vm228_vm0 = vcmask 1043456   ;;  %v223_v0 = vld [vmem:[%s185_s6] sm:$0xff]  ;;  %v267_v13 = vlaneseq  ;;  %v224_v22 = vld [vmem:[%s194_s16] sm:$0x3]  ;;  %v721_v26 = vmov 0.0  }
  0x59   : > { %v226_v1 = vcombine.high %v223_v0, %v223_v0  ;;  %v229_v2 = vsel %vm228_vm0, %v223_v0, -inf  ;;  %s219_s21 = scalar_lea.vmem [#allocation7], %s479_s5  ;;  %s490_s30 = sshll.u32 %s709_s12, 5 }
  0x5a   : > { %v230_v3 = vrot.slane %v229_v2, 4  ;;  %v906_v17 = vshrl.u32 %v267_v13, 7  ;;  %s357_s19 = sshll.u32 %s219_s21, 4  ;;  %vm337_vm3 = vcmp.lt.s32.totalorder %v267_v13, 256  ;;  %s926_s27 = scalar_lea.hbm %s975_s2, %s490_s30  ;;  %s921_s19 = int_to_ptr.vmem [resolvable:$true] %s357_s19 }
  0x5b   : > { %v236_v4 = vsel %vm228_vm0, %v226_v1, -inf  ;;  %s341_s28 = scalar_lea.sflag [#allocation4], %s887_s15  ;;  %s631_s25 = scalar_lea.vmem %s921_s19, 32 }
  0x5c   : > { %v231_v5 = vmax.f32 %v229_v2, %v230_v3  ;;  %v237_v6 = vrot.slane %v236_v4, 4  ;;  %v271_v20 = vsub.s32 0, %v906_v17  ;;  %v275_v23 = vsub.s32 1, %v906_v17  ;;  %p632_p8 = scmp.ne.s32.totalorder %s921_s19, %s631_s25  ;;  %p988_p0 = scmp.ne.s32.totalorder %s980_s22, 0 }
  0x5d   : > { %s723_s12 = smov [#allocation7]  }
  0x5e   : > { %v232_v7 = vrot.slane %v231_v5, 2  ;;  %v238_v8 = vmax.f32 %v236_v4, %v237_v6  ;;  %v272_v24 = vrot.slane %v224_v22, %v271_v20  ;;  %v276_v25 = vrot.slane %v224_v22, %v275_v23  ;;  %p633_p7 = pnand %p632_p8, %p988_p0  ;;  %s635_s3 = sshll.u32 %s723_s12, 4  ;;  %s636_s3 = int_to_ptr.vmem [resolvable:$false] %s635_s3 }
  0x5f   : > { %s637_s7 = scalar_lea.vmem %s636_s3, 64  ;;  %p638_p10 = scmp.lt.s32.totalorder %s921_s19, %s636_s3 }
  0x60   : > { %v233_v9 = vmax.f32 %v231_v5, %v232_v7  ;;  %v239_v10 = vrot.slane %v238_v8, 2  ;;  %vm277_vm1 = vcmp.eq.s32.totalorder %v906_v17, %v272_v24  ;;  %vm278_vm2 = vcmp.eq.s32.totalorder %v906_v17, %v276_v25  ;;  %p634_p4 = pneg %p633_p7  ;;  %p639_p12 = scmp.lt.s32.totalorder %s637_s7, %s631_s25 }
  0x61   : > { %v481_v27 = vsel %vm277_vm1, 1.0, %v721_v26  ;;  %v482_v29 = vsel %vm278_vm2, 1.0, %v721_v26  ;;  %v722_v7 = vmov 1966171168  }
  0x62   : > { %v234_v11 = vrot.slane %v233_v9, 1  ;;  %v240_v12 = vmax.f32 %v238_v8, %v239_v10  ;;  %v321_v8 = vunpack.c.l.s4 %v722_v7  ;;  %p640_p1 = por %p639_p12, %p638_p10 }
  0x64   : > { %v235_v14 = vmax.f32 %v233_v9, %v234_v11  ;;  %v241_v15 = vrot.slane %v240_v12, 1  ;;  %p641_p2 = pnand %p640_p1, %p634_p4 }
  0x66   : > { %v242_v16 = vmax.f32 %v240_v12, %v241_v15 }
  0x68   : > { %v245_v18 = vcombine.low %v235_v14, %v242_v16  ;;  %v322_v14 = vunpack.c.0.s8 %v321_v8 }
  0x6a   : > { %v247_v19 = vsub.f32 %v223_v0, %v245_v18  ;;  %v325_v20 = vsub.s32 %v322_v14, %v906_v17 }
  0x6c   : > { %v248_v21 = vmul.f32 1.442695, %v247_v19 }
  0x6e   : > { %561 = vpow2.f32 %v248_v21 }
  0x78   : > { %v562_v28 = vpop.eup %561 }
  0x79   : > { %v251_v30 = vcombine.high %v562_v28, %v562_v28  ;;  %v253_v31 = vsel %vm228_vm0, %v562_v28, 0.0  ;;  %v283_v32 = vmul.f32 %v562_v28, %v481_v27 }
  0x7a   : > { %v254_v33 = vrot.slane %v253_v31, 4 }
  0x7b   : > { %v260_v34 = vsel %vm228_vm0, %v251_v30, 0.0  ;;  %v284_v35 = vmul.f32 %v482_v29, %v251_v30  ;;  %v285_v36 = vsel %vm228_vm0, %v283_v32, 0.0 }
  0x7c   : > { %v255_v37 = vadd.f32 %v254_v33, %v253_v31  ;;  %v261_v38 = vrot.slane %v260_v34, 4  ;;  %v286_v39 = vrot.slane %v285_v36, 4 }
  0x7d   : > { %v292_v40 = vsel %vm228_vm0, %v284_v35, 0.0 }
  0x7e   : > { %v256_v41 = vrot.slane %v255_v37, 2  ;;  %v262_v42 = vadd.f32 %v261_v38, %v260_v34  ;;  %v287_v43 = vadd.f32 %v286_v39, %v285_v36  ;;  %v293_v44 = vrot.slane %v292_v40, 4 }
  0x80   : > { %v257_v45 = vadd.f32 %v256_v41, %v255_v37  ;;  %v263_v46 = vrot.slane %v262_v42, 2  ;;  %v294_v47 = vadd.f32 %v293_v44, %v292_v40  ;;  %v288_v48 = vrot.slane %v287_v43, 2 }
  0x82   : > { %v258_v49 = vrot.slane %v257_v45, 1  ;;  %v264_v50 = vadd.f32 %v263_v46, %v262_v42  ;;  %v295_v51 = vrot.slane %v294_v47, 2  ;;  %v289_v54 = vadd.f32 %v288_v48, %v287_v43 }
  0x84   : > { %v259_v52 = vadd.f32 %v258_v49, %v257_v45  ;;  %v265_v53 = vrot.slane %v264_v50, 1  ;;  %v296_v56 = vadd.f32 %v295_v51, %v294_v47  ;;  %v290_v57 = vrot.slane %v289_v54, 1 }
  0x86   : > { %v266_v55 = vadd.f32 %v265_v53, %v264_v50  ;;  %563 = vrcp.f32 %v259_v52  ;;  %v297_v58 = vrot.slane %v296_v56, 1  ;;  %v291_v59 = vadd.f32 %v290_v57, %v289_v54 }
  0x88   : > { %565 = vrcp.f32 %v266_v55  ;;  %v298_v60 = vadd.f32 %v297_v58, %v296_v56 }
  0x90   : > { %v564_v61 = vpop.eup %563 }
  0x91   : > { %v301_v62 = vmul.f32 %v564_v61, %v291_v59 }
  0x92   : > { %v566_v63 = vpop.eup %565 }
  0x93   : > { %v302_v0 = vmul.f32 %v566_v63, %v298_v60  ;;  %v303_v1 = vadd.f32 1e-06, %v301_v62 }
  0x95   : > { %v304_v2 = vadd.f32 1e-06, %v302_v0  ;;  %567 = vlog2.f32 %v303_v1  ;;  %v305_v3 = vsub.f32 1.0, %v303_v1 }
  0x97   : > { %569 = vlog2.f32 %v304_v2  ;;  %v306_v4 = vsub.f32 1.0, %v304_v2  ;;  %v307_v5 = vmul.f32 %v305_v3, %v305_v3 }
  0x99   : > { %v308_v6 = vmul.f32 %v306_v4, %v306_v4  ;;  %v309_v9 = vmul.f32 -0.5, %v307_v5 }
  0x9b   : > { %v310_v11 = vmul.f32 -0.5, %v308_v6 }
  0x9f   : > { %v568_v10 = vpop.eup %567 }
  0xa0   : > { %v312_v12 = vmul.f32 0.6931472, %v568_v10 }
  0xa1   : > { %v570_v15 = vpop.eup %569 }
  0xa2   : > { %v314_v16 = vmul.f32 0.6931472, %v570_v15  ;;  %v315_v18 = vmul.f32 %v312_v12, %v309_v9 }
  0xa4   : > { %v316_v19 = vmul.f32 %v314_v16, %v310_v11 }
  0xa6   : > { %v319_v21 = vcombine.low %v315_v18, %v316_v19 }
  0xa8   : > { %v326_v22 = vrot.slane %v319_v21, %v325_v20 }
  0xaa   : > { %v333_v23 = vrot.slane %v326_v22, %v325_v20 }
  0xac   : > { %339 = vst.msk [vmem:[%s219_s21] sm:$0x3] %vm337_vm3, %v333_v23 }
  0xad   : > { %644 = shalt.err (!%p641_p2)
}
  0xae   : > { %s645_s8 = scalar_lea.hbm %s926_s27, 32  ;;  %s649_s4 = scalar_lea.hbm %s975_s2, 64 }
  0xaf   : > { %p646_p9 = scmp.ne.s32.totalorder %s926_s27, %s645_s8  ;;  %p650_p6 = scmp.lt.u32.totalorder %s926_s27, %s975_s2 }
  0xb0   : > { %p651_p13 = scmp.lt.u32.totalorder %s649_s4, %s645_s8  ;;  %p653_p8 = scmp.lt.u32.totalorder %s645_s8, %s926_s27 }
  0xb1   : > { %p647_p11 = pnand %p646_p9, %p988_p0 }
  0xb2   : > { %p652_p5 = por %p651_p13, %p650_p6 }
  0xb3   : > { %p648_p3 = pneg %p647_p11 }
  0xb4   : > { %p654_p7 = por %p653_p8, %p652_p5 }
  0xb6   : > { %p655_p4 = pnand %p654_p7, %p648_p3 }
  0xb8   : > { %658 = shalt.err (!%p655_p4)
}
  0xb9   : > { %495 = dma.vmem_to_hbm [thread:$0]  (%p988_p0), %s921_s19, 32, %s926_s27, %s341_s28  }
  0xba PF: > { %s369_s29 = sand.u32 1, %s697_s9   ;;  %p989_p10 = scmp.ne.s32.totalorder %s981_s24, 0 }
  0xbb   : > { %p990_p12 = scmp.ge.s32.totalorder %s717_s14, 2  ;;  %s370_s16 = scalar_lea.sflag [#allocation4], %s369_s29 }
  0xbd   : > { %p505_p1 = pnand %p990_p12, %p989_p10 }
  0xbf   : > { %692 = dma.done.wait (!%p505_p1), %s370_s16, 32  }
  0xc0   : > { %694 = vsyncadd (!%p505_p1), %s370_s16, 4294967264  ;;  %s21_s14 = sadd.s32 1, %s717_s14   ;;  %s991_s9 = smov %s701_s10 }
  0xc1   : > { %p18_p2 = scmp.ge.s32.totalorder %s21_s14, 4   ;;  %s992_s10 = smov %s705_s11 }
  0xc2   : > { %s993_s11 = smov %s795_s23  ;;  %s994_s12 = smov %s713_s13 }
  0xc3   : > { %s995_s13 = smov %s997_s17  ;;  %20 = sbr.rel (!%p18_p2) target bundleno = 8 (0x8), region = 86 }
  0xca   :  { %375 = vsyncpa [#allocation3], 1 }
  0xcb   :  { %377 = vsyncpa [#allocation3 + $0x1], 1 }
  0xcc   :  { %378 = vsyncpa [#allocation6], 1 }
  0xcd   :  { %380 = vsyncpa [#allocation6 + $0x1], 1 }
  0xce   :  { %381 = vsyncpa [#allocation4], 1 }
  0xcf   :  { %383 = vsyncpa [#allocation4 + $0x1], 1 }

</bundles_post_ra>
